<compile_context>
chip_gen: v6e
topology: v6e:2x2x1
jax: 0.10.0
libtpu: 0.0.40
codegen_flags: <defaults>
</compile_context>

<pallas_src>
import jax
import jax.numpy as jnp
from jax.experimental import pallas as pl
from jax.experimental.pallas import tpu as pltpu

# ----- problem sizes (small, consistent with an image backbone stem) --------
N, CIN, H, W = 2, 3, 16, 16     # input (NCHW on the PyTorch side)
COUT = 32                       # stem output channels
KH = KW = 3                     # 3x3 conv, stride 1, padding 1 ("same")
KTOT = KH * KW * CIN            # 27  (im2col contraction dim)
HW = H * W                      # 256 (per-image lane-dense output width)
NHW = N * HW                    # 512 (merged-batch lane width)


def _stem_kernel(patches_ref, w_ref, bias_ref, o_ref):
    """Whole batch, one MXU matmul.

    patches_ref : (KTOT, N*HW)  bf16  im2col patches (built in the wrapper)
    w_ref       : (COUT, KTOT)  bf16  conv weights with BN scale folded in
    bias_ref    : (COUT, 1)     f32   folded BN bias (+ conv bias)
    o_ref       : (N, COUT, HW) bf16  lane-dense NCHW-flat output
    """
    acc = jnp.dot(w_ref[...], patches_ref[...],
                  preferred_element_type=jnp.float32)      # (COUT, N*HW) f32
    y = jax.nn.sigmoid(acc + bias_ref[...])                # f32 epilogue
    for n in range(N):                                     # static unroll, N=2
        # 256-lane slices at multiples of 128 -> unmasked vector stores.
        o_ref[n] = y[:, n * HW:(n + 1) * HW].astype(o_ref.dtype)


def stem_forward(x_nchw, w_hwio, bn_scale, bn_bias):
    """x_nchw: (N, CIN, H, W) f32 -> features (N, COUT, H, W) bf16."""
    # --- wrapper-side glue (pure XLA: fold BN, pad, im2col — no lane transposes)
    w_folded = w_hwio * bn_scale.reshape(1, 1, 1, COUT)          # fold BN scale
    wk = jnp.transpose(
        w_folded.reshape(KTOT, COUT)).astype(jnp.bfloat16)       # (COUT, KTOT)
    bias = bn_bias.reshape(COUT, 1).astype(jnp.float32)

    # Channel-major view of the tiny (6 KB) input; leading-dim swap only, the
    # minor (H, W) dims are untouched.
    x_cnhw = jnp.transpose(x_nchw, (1, 0, 2, 3)).astype(jnp.bfloat16)  # (CIN,N,H,W)
    x_pad = jnp.pad(x_cnhw, ((0, 0), (0, 0), (1, 1), (1, 1)))
    taps = [x_pad[:, :, kh:kh + H, kw:kw + W]                    # each (CIN,N,H,W)
            for kh in range(KH) for kw in range(KW)]
    # (9, CIN, N, H, W) -> (KTOT, N*HW); K ordering (kh,kw,cin) matches the
    # HWIO weight reshape above, columns are n*HW + h*W + w.
    patches = jnp.stack(taps, axis=0).reshape(KTOT, NHW)

    out = pl.pallas_call(
        _stem_kernel,
        out_shape=jax.ShapeDtypeStruct((N, COUT, HW), jnp.bfloat16),
        in_specs=[
            pl.BlockSpec(memory_space=pltpu.MemorySpace.VMEM),
            pl.BlockSpec(memory_space=pltpu.MemorySpace.VMEM),
            pl.BlockSpec(memory_space=pltpu.MemorySpace.VMEM),
        ],
        out_specs=pl.BlockSpec(memory_space=pltpu.MemorySpace.VMEM),
    )(patches, wk, bias)

    # NCHW result via a pure reshape (no transpose needed).
    return out.reshape(N, COUT, H, W)


def _reference(x_nchw, w_hwio, bn_scale, bn_bias):
    """Plain-JAX reference using the SAME bf16 operands / f32 accumulation."""
    w_folded = (w_hwio * bn_scale.reshape(1, 1, 1, COUT)).astype(jnp.bfloat16)
    x_nhwc = jnp.transpose(x_nchw, (0, 2, 3, 1)).astype(jnp.bfloat16)
    y = jax.lax.conv_general_dilated(
        x_nhwc, w_folded, window_strides=(1, 1), padding="SAME",
        dimension_numbers=("NHWC", "HWIO", "NHWC"),
        preferred_element_type=jnp.float32)
    y = jax.nn.sigmoid(y + bn_bias.reshape(1, 1, 1, COUT))
    return jnp.transpose(y, (0, 3, 1, 2))


if __name__ == "__main__":
    key = jax.random.PRNGKey(0)
    kx, kw, ks, kb = jax.random.split(key, 4)

    # deterministic synthetic inputs / parameters
    x = jax.random.normal(kx, (N, CIN, H, W), dtype=jnp.float32)
    w = jax.random.normal(kw, (KH, KW, CIN, COUT), dtype=jnp.float32) * 0.1
    bn_scale = 1.0 + 0.05 * jax.random.normal(ks, (1, COUT), dtype=jnp.float32)
    bn_bias = 0.05 * jax.random.normal(kb, (1, COUT), dtype=jnp.float32)

    out = jax.block_until_ready(stem_forward(x, w, bn_scale, bn_bias))
    ref = _reference(x, w, bn_scale, bn_bias)

    assert out.shape == (N, COUT, H, W)
    # Same bf16 operands / f32 accumulation in both paths; residual differences
    # are accumulation-order noise plus bf16 rounding of the (0,1) output.
    assert jnp.allclose(out.astype(jnp.float32), ref, atol=1e-2, rtol=1e-2), \
        "mismatch vs reference"

    print("KERNEL_OK")
</pallas_src>

<mosaic_0001>
module attributes {stable_mosaic.version = 11 : i64} {
  func.func @_stem_kernel(%arg0: memref<27x512xbf16, #tpu.memory_space<vmem>>, %arg1: memref<32x27xbf16, #tpu.memory_space<vmem>>, %arg2: memref<32x1xf32, #tpu.memory_space<vmem>>, %arg3: memref<2x32x256xbf16, #tpu.memory_space<vmem>>) attributes {dimension_semantics = [], scalar_prefetch = 0 : i64, scratch_operands = 0 : i64, tpu.core_type = #tpu.core_type<tc>} {
    %c0 = arith.constant 0 : index
    %c0_0 = arith.constant 0 : index
    %0 = vector.load %arg1[%c0, %c0_0] : memref<32x27xbf16, #tpu.memory_space<vmem>>, vector<32x27xbf16>
    %c0_1 = arith.constant 0 : index
    %c0_2 = arith.constant 0 : index
    %1 = vector.load %arg0[%c0_1, %c0_2] : memref<27x512xbf16, #tpu.memory_space<vmem>>, vector<27x512xbf16>
    %cst = arith.constant dense<0.000000e+00> : vector<32x512xf32>
    %2 = tpu.matmul %0, %1, %cst {dimension_numbers = #tpu.dot_dimension_numbers<[1], [0], [0], [1], [0, 0, 1, 1], [], []>} : vector<32x27xbf16>, vector<27x512xbf16>, vector<32x512xf32> -> vector<32x512xf32>
    %c0_3 = arith.constant 0 : index
    %c0_4 = arith.constant 0 : index
    %3 = vector.load %arg2[%c0_3, %c0_4] : memref<32x1xf32, #tpu.memory_space<vmem>>, vector<32x1xf32>
    %4 = vector.broadcast %3 : vector<32x1xf32> to vector<32x512xf32>
    %5 = arith.addf %2, %4 : vector<32x512xf32>
    %6 = arith.negf %5 : vector<32x512xf32>
    %7 = math.exp %6 : vector<32x512xf32>
    %cst_5 = arith.constant 1.000000e+00 : f32
    %8 = vector.broadcast %cst_5 : f32 to vector<32x512xf32>
    %9 = arith.addf %8, %7 : vector<32x512xf32>
    %10 = arith.divf %8, %9 : vector<32x512xf32>
    %11 = vector.extract_strided_slice %10 {offsets = [0, 0], sizes = [32, 256], strides = [1, 1]} : vector<32x512xf32> to vector<32x256xf32>
    %12 = arith.truncf %11 : vector<32x256xf32> to vector<32x256xbf16>
    %c0_6 = arith.constant 0 : index
    %c0_7 = arith.constant 0 : index
    %c0_8 = arith.constant 0 : index
    %13 = vector.load %arg3[%c0_6, %c0_7, %c0_8] : memref<2x32x256xbf16, #tpu.memory_space<vmem>>, vector<1x32x256xbf16>
    %14 = vector.shape_cast %13 : vector<1x32x256xbf16> to vector<32x256xbf16>
    %15 = vector.shape_cast %12 : vector<32x256xbf16> to vector<1x32x256xbf16>
    tpu.vector_store %arg3[%c0_6, %c0_7, %c0_8], %15 {strides = array<i32>} : memref<2x32x256xbf16, #tpu.memory_space<vmem>>, vector<1x32x256xbf16>,
    %16 = vector.extract_strided_slice %10 {offsets = [0, 256], sizes = [32, 256], strides = [1, 1]} : vector<32x512xf32> to vector<32x256xf32>
    %17 = arith.truncf %16 : vector<32x256xf32> to vector<32x256xbf16>
    %c1 = arith.constant 1 : index
    %c0_9 = arith.constant 0 : index
    %c0_10 = arith.constant 0 : index
    %18 = vector.load %arg3[%c1, %c0_9, %c0_10] : memref<2x32x256xbf16, #tpu.memory_space<vmem>>, vector<1x32x256xbf16>
    %19 = vector.shape_cast %18 : vector<1x32x256xbf16> to vector<32x256xbf16>
    %20 = vector.shape_cast %17 : vector<32x256xbf16> to vector<1x32x256xbf16>
    tpu.vector_store %arg3[%c1, %c0_9, %c0_10], %20 {strides = array<i32>} : memref<2x32x256xbf16, #tpu.memory_space<vmem>>, vector<1x32x256xbf16>,
    return
  }
}

</mosaic_0001>

<bundles_post_ra>
// kernel: tpu_custom_call.1
= control target key start
LH: loop header
LB: loop body
LE: loop exit
PB: predicated region body
PF: predicated region fallthrough
CT: control target
= control target key end

     0   :  { %8 = vsyncpa [#allocation3], 0  ;;  %s641_s0 = inlined_call_operand.hbm [shape: bf16[27,512], index: 0, kind: input, shape index: {}]   ;;  %s642_s1 = inlined_call_operand.vmem [shape: bf16[32,27], index: 1, kind: input, shape index: {}]   ;;  %s643_s2 = inlined_call_operand.vmem [shape: f32[32,1], index: 2, kind: input, shape index: {}]   ;;  %s644_s3 = inlined_call_operand.hbm [shape: bf16[2,32,256], index: 3, kind: output, shape index: {}]  }
   0x1   :  { %9 = vsyncpa [#allocation4], 0  ;;  %s589_s12 = smov [#allocation2]  }
   0x2   :  { %s15_s13 = sshll.u32 %s589_s12, 4  ;;  %s16_s13 = int_to_ptr.vmem [resolvable:$true] %s15_s13 }
   0x3   :  { %s553_s14 = scalar_lea.vmem %s16_s13, 1024  ;;  %p558_p1 = scmp.lt.s32.totalorder %s16_s13, %s16_s13 }
   0x4   :  { %p554_p0 = scmp.ne.s32.totalorder %s16_s13, %s553_s14  ;;  %p559_p2 = scmp.lt.s32.totalorder %s553_s14, %s553_s14 }
   0x6   :  { %p560_p3 = por %p559_p2, %p558_p1 }
   0x8   :  { %p561_p4 = pnand %p560_p3, %p554_p0 }
   0xa   :  { %564 = shalt.err (!%p561_p4)
}
   0xb   :  { %s590_s15 = smov 256   ;;  %s591_s16 = smov 16  }
   0xc   :  { %21 = dma.hbm_to_vmem [thread:$0]  %s641_s0, 1024, %s16_s13, [#allocation3], %s590_s15, %s590_s15, %s591_s16  }
   0xd   :  { %585 = dma.done.wait [#allocation3], 1024  }
   0xe   :  { %586 = vsyncadd [#allocation3], 4294966272  ;;  %vm119_vm0 = vcmask 1044480   ;;  %v592_v0 = vmov 0   ;;  %vm120_vm1 = vcmask 1045504   ;;  %v593_v1 = vmov 65535  }
   0xf   :  { %167 = vmatprep.mubr.bf16.mxu0 %v592_v0  ;;  %220 = vmatprep.mubr.bf16.mxu1 %v592_v0  ;;  %v121_v2 = vsel %vm119_vm0, 4294967295, %v593_v1  ;;  %v467_v4 = vld [vmem:[#allocation2 + $0x24] ss:$16 sps:$4 sm:$0x3f]   ;;  %v475_v13 = vld [vmem:[#allocation2 + $0xc] ss:$16 sps:$4 sm:$0xff]  }
  0x10   :  { %465 = vset.pattern.permute.xlu0 %v592_v0  ;;  %466 = vset.pattern.permute.xlu1 %v592_v0  ;;  %v122_v3 = vsel %vm120_vm1, %v121_v2, 0  ;;  %v469_v5 = vld [vmem:[#allocation2 + $0x2c] ss:$16 sps:$4 sm:$0x3f]   ;;  %v473_v10 = vld [vmem:[#allocation2 + $0x4] ss:$16 sps:$4 sm:$0xff]  }
  0x11   :  { %v127_v6 = vand.u32 %v467_v4, %v122_v3  ;;  %v471_v7 = vld [vmem:[#allocation2 + $0x20] ss:$16 sps:$4 sm:$0x3f]   ;;  %v472_v8 = vld [vmem:[#allocation2 + $0x28] ss:$16 sps:$4 sm:$0x3f]   ;;  %v133_v9 = vand.u32 %v469_v5, %v122_v3 }
  0x12   :  { %v124_v11 = vand.u32 %v471_v7, %v122_v3  ;;  %v130_v12 = vand.u32 %v472_v8, %v122_v3  ;;  %v477_v14 = vld [vmem:[#allocation2] ss:$16 sps:$4 sm:$0xff]   ;;  %v478_v15 = vld [vmem:[#allocation2 + $0x8] ss:$16 sps:$4 sm:$0xff]   ;;  %vm112_vm2 = vcmask 220160  }
  0x13   :  { %147 = vmatprep.subr.bf16.mxu0 %v127_v6  ;;  %200 = vmatprep.subr.bf16.mxu1 %v133_v9  ;;  %v42_v16 = vld [vmem:[%s643_s2] sm:$0xff]  ;;  %v44_v17 = vld [vmem:[%s643_s2 + $0x10] sm:$0xff]  ;;  %v43_v19 = vld [vmem:[%s643_s2 + $0x8] sm:$0xff] }
  0x14   :  { %148 = vmatpush1.bf16.msra.mxu0 %v124_v11  ;;  %201 = vmatpush1.bf16.msra.mxu1 %v130_v12  ;;  %v479_v18 = vld [vmem:[%s642_s1] sm:$0xff]   ;;  %v45_v20 = vld [vmem:[%s643_s2 + $0x18] sm:$0xff]  ;;  %v480_v21 = vld [vmem:[%s642_s1 + $0x8] sm:$0xff]   ;;  %s594_s1 = smov [#allocation5]  }
  0x15   :  { %149 = vmatprep.subr.bf16.mxu0 %v473_v10  ;;  %202 = vmatprep.subr.bf16.mxu1 %v475_v13  ;;  %s399_s2 = sshll.u32 %s594_s1, 4  ;;  %s400_s2 = int_to_ptr.vmem [resolvable:$true] %s399_s2 }
  0x16   :  { %48 = vperm.xlu0 %465, %v42_v16   ;;  %58 = vperm.xlu1 %466, %v44_v17   ;;  %s565_s30 = scalar_lea.vmem %s400_s2, 1024  ;;  %p570_p6 = scmp.lt.s32.totalorder %s400_s2, %s400_s2 }
  0x17   :  { %p566_p5 = scmp.ne.s32.totalorder %s400_s2, %s565_s30  ;;  %p571_p7 = scmp.lt.s32.totalorder %s565_s30, %s565_s30 }
  0x18   :  { %150 = vmatpush1.bf16.msra.mxu0 %v477_v14  ;;  %203 = vmatpush1.bf16.msra.mxu1 %v478_v15 }
  0x19   :  { %p572_p8 = por %p571_p7, %p570_p6 }
  0x1a   :  { %53 = vperm.xlu0 %465, %v43_v19   ;;  %63 = vperm.xlu1 %466, %v45_v20  }
  0x1b   :  { %421 = vmatmul.mubr.msk.bf16.vlgmr.msra.gmra.mxu0 %vm112_vm2, %v479_v18  ;;  %423 = vmatmul.mubr.msk.bf16.vlgmr.msra.gmra.mxu1 %vm112_vm2, %v479_v18  ;;  %p573_p9 = pnand %p572_p8, %p566_p5 }
  0x1c   :  { %177 = vmatprep.mubr.bf16.mxu0 %v592_v0  ;;  %230 = vmatprep.mubr.bf16.mxu1 %v592_v0 }
  0x23   :  { %422 = vmatmul.mubr.msk.bf16.gmra.mxu0 %vm112_vm2, %v480_v21  ;;  %424 = vmatmul.mubr.msk.bf16.gmra.mxu1 %vm112_vm2, %v480_v21 }
  0x91   :  { %v49_v22 = vpop.permute.xlu0 %48  ;;  %v59_v39 = vpop.permute.xlu1 %58 }
  0x95   :  { %v54_v27 = vpop.permute.xlu0 %53  ;;  %v64_v56 = vpop.permute.xlu1 %63 }
  0xdb   :  { %v169_v23 = vpop.f32.mrf.mxu0  ;;  %v222_v24 = vpop.f32.mrf.mxu1 }
  0xdc   :  { %v170_v25 = vadd.f32 %v169_v23, %v49_v22  ;;  %v223_v26 = vadd.f32 %v222_v24, %v49_v22 }
  0xdd   :  { %v171_v28 = vpop.f32.mrf.mxu0  ;;  %v224_v29 = vpop.f32.mrf.mxu1 }
  0xde   :  { %v425_v30 = vmul.f32 -1.442695, %v170_v25  ;;  %v427_v31 = vmul.f32 -1.442695, %v223_v26  ;;  %v172_v32 = vadd.f32 %v171_v28, %v49_v22  ;;  %v225_v33 = vadd.f32 %v224_v29, %v49_v22 }
  0xdf   :  { %v173_v34 = vpop.f32.mrf.mxu0  ;;  %v226_v35 = vpop.f32.mrf.mxu1 }
  0xe0   :  { %481 = vpow2.f32 %v425_v30  ;;  %v426_v36 = vmul.f32 -1.442695, %v172_v32  ;;  %v428_v37 = vmul.f32 -1.442695, %v225_v33  ;;  %v174_v38 = vadd.f32 %v173_v34, %v54_v27 }
  0xe1   :  { %483 = vpow2.f32 %v427_v31  ;;  %v227_v40 = vadd.f32 %v226_v35, %v54_v27  ;;  %v175_v41 = vpop.f32.mrf.mxu0  ;;  %v228_v42 = vpop.f32.mrf.mxu1 }
  0xe2   :  { %485 = vpow2.f32 %v426_v36  ;;  %v429_v43 = vmul.f32 -1.442695, %v174_v38  ;;  %v176_v44 = vadd.f32 %v175_v41, %v54_v27  ;;  %v229_v45 = vadd.f32 %v228_v42, %v54_v27 }
  0xe3   :  { %487 = vpow2.f32 %v428_v37  ;;  %v431_v46 = vmul.f32 -1.442695, %v227_v40  ;;  %v179_v47 = vpop.f32.mrf.mxu0  ;;  %v232_v48 = vpop.f32.mrf.mxu1 }
  0xe4   :  { %489 = vpow2.f32 %v429_v43  ;;  %v430_v49 = vmul.f32 -1.442695, %v176_v44  ;;  %v432_v50 = vmul.f32 -1.442695, %v229_v45  ;;  %v180_v51 = vadd.f32 %v179_v47, %v59_v39 }
  0xe5   :  { %491 = vpow2.f32 %v431_v46  ;;  %v233_v52 = vadd.f32 %v232_v48, %v59_v39  ;;  %v181_v53 = vpop.f32.mrf.mxu0  ;;  %v234_v54 = vpop.f32.mrf.mxu1 }
  0xe6   :  { %493 = vpow2.f32 %v430_v49  ;;  %v433_v55 = vmul.f32 -1.442695, %v180_v51  ;;  %v182_v57 = vadd.f32 %v181_v53, %v59_v39  ;;  %v235_v58 = vadd.f32 %v234_v54, %v59_v39 }
  0xe7   :  { %495 = vpow2.f32 %v432_v50  ;;  %v435_v59 = vmul.f32 -1.442695, %v233_v52  ;;  %v183_v60 = vpop.f32.mrf.mxu0  ;;  %v236_v61 = vpop.f32.mrf.mxu1 }
  0xe8   :  { %497 = vpow2.f32 %v433_v55  ;;  %v434_v62 = vmul.f32 -1.442695, %v182_v57  ;;  %v436_v63 = vmul.f32 -1.442695, %v235_v58  ;;  %v184_v0 = vadd.f32 %v183_v60, %v64_v56 }
  0xe9   :  { %499 = vpow2.f32 %v435_v59  ;;  %v237_v1 = vadd.f32 %v236_v61, %v64_v56  ;;  %v185_v2 = vpop.f32.mrf.mxu0  ;;  %v238_v3 = vpop.f32.mrf.mxu1 }
  0xea   :  { %501 = vpow2.f32 %v434_v62  ;;  %v437_v4 = vmul.f32 -1.442695, %v184_v0  ;;  %v186_v5 = vadd.f32 %v185_v2, %v64_v56  ;;  %v239_v6 = vadd.f32 %v238_v3, %v64_v56 }
  0xeb   :  { %503 = vpow2.f32 %v436_v63  ;;  %v439_v7 = vmul.f32 -1.442695, %v237_v1 }
  0xec   :  { %505 = vpow2.f32 %v437_v4  ;;  %v438_v8 = vmul.f32 -1.442695, %v186_v5  ;;  %v440_v9 = vmul.f32 -1.442695, %v239_v6 }
  0xed   :  { %v482_v10 = vpop.eup %481  ;;  %507 = vpow2.f32 %v439_v7 }
  0xee   :  { %v484_v11 = vpop.eup %483  ;;  %v289_v12 = vadd.f32 1.0, %v482_v10  ;;  %509 = vpow2.f32 %v438_v8 }
  0xef   :  { %v486_v13 = vpop.eup %485  ;;  %v291_v14 = vadd.f32 1.0, %v484_v11  ;;  %511 = vpow2.f32 %v440_v9 }
  0xf0   :  { %v488_v15 = vpop.eup %487  ;;  %513 = vrcp.f32 %v289_v12  ;;  %v290_v16 = vadd.f32 1.0, %v486_v13 }
  0xf1   :  { %v490_v17 = vpop.eup %489  ;;  %515 = vrcp.f32 %v291_v14  ;;  %v292_v18 = vadd.f32 1.0, %v488_v15 }
  0xf2   :  { %v492_v19 = vpop.eup %491  ;;  %517 = vrcp.f32 %v290_v16  ;;  %v293_v20 = vadd.f32 1.0, %v490_v17 }
  0xf3   :  { %v494_v21 = vpop.eup %493  ;;  %519 = vrcp.f32 %v292_v18  ;;  %v295_v22 = vadd.f32 1.0, %v492_v19 }
  0xf4   :  { %v496_v23 = vpop.eup %495  ;;  %521 = vrcp.f32 %v293_v20  ;;  %v294_v24 = vadd.f32 1.0, %v494_v21 }
  0xf5   :  { %v498_v25 = vpop.eup %497  ;;  %523 = vrcp.f32 %v295_v22  ;;  %v296_v26 = vadd.f32 1.0, %v496_v23 }
  0xf6   :  { %v500_v27 = vpop.eup %499  ;;  %525 = vrcp.f32 %v294_v24  ;;  %v297_v28 = vadd.f32 1.0, %v498_v25 }
  0xf7   :  { %v502_v29 = vpop.eup %501  ;;  %527 = vrcp.f32 %v296_v26  ;;  %v299_v30 = vadd.f32 1.0, %v500_v27 }
  0xf8   :  { %v504_v31 = vpop.eup %503  ;;  %529 = vrcp.f32 %v297_v28  ;;  %v298_v32 = vadd.f32 1.0, %v502_v29 }
  0xf9   :  { %v506_v33 = vpop.eup %505  ;;  %531 = vrcp.f32 %v299_v30  ;;  %v300_v34 = vadd.f32 1.0, %v504_v31 }
  0xfa   :  { %v508_v35 = vpop.eup %507  ;;  %533 = vrcp.f32 %v298_v32  ;;  %v301_v36 = vadd.f32 1.0, %v506_v33 }
  0xfb   :  { %v510_v37 = vpop.eup %509  ;;  %535 = vrcp.f32 %v300_v34  ;;  %v303_v38 = vadd.f32 1.0, %v508_v35 }
  0xfc   :  { %v512_v39 = vpop.eup %511  ;;  %537 = vrcp.f32 %v301_v36  ;;  %v302_v40 = vadd.f32 1.0, %v510_v37 }
  0xfd   :  { %v514_v41 = vpop.eup %513  ;;  %539 = vrcp.f32 %v303_v38  ;;  %v304_v42 = vadd.f32 1.0, %v512_v39 }
  0xfe   :  { %v516_v43 = vpop.eup %515  ;;  %541 = vrcp.f32 %v302_v40 }
  0xff   :  { %v518_v44 = vpop.eup %517  ;;  %543 = vrcp.f32 %v304_v42 }
 0x100   :  { %v520_v45 = vpop.eup %519  ;;  %v449_v46 = vpack.c.bf16 %v518_v44, %v514_v41 }
 0x101   :  { %v522_v47 = vpop.eup %521  ;;  %v453_v48 = vpack.c.bf16 %v520_v45, %v516_v43 }
 0x102   :  { %v524_v49 = vpop.eup %523  ;;  %361 = vst [vmem:[#allocation5] sm:$0xff] %v449_v46 }
 0x103   :  { %v526_v50 = vpop.eup %525  ;;  %390 = vst [vmem:[#allocation5 + $0x20] sm:$0xff] %v453_v48 }
 0x104   :  { %v528_v51 = vpop.eup %527  ;;  %v450_v52 = vpack.c.bf16 %v526_v50, %v522_v47 }
 0x105   :  { %v530_v53 = vpop.eup %529  ;;  %v454_v54 = vpack.c.bf16 %v528_v51, %v524_v49 }
 0x106   :  { %v532_v55 = vpop.eup %531  ;;  %362 = vst [vmem:[#allocation5 + $0x8] sm:$0xff] %v450_v52 }
 0x107   :  { %v534_v56 = vpop.eup %533  ;;  %391 = vst [vmem:[#allocation5 + $0x28] sm:$0xff] %v454_v54 }
 0x108   :  { %v536_v57 = vpop.eup %535  ;;  %v451_v58 = vpack.c.bf16 %v534_v56, %v530_v53 }
 0x109   :  { %v538_v59 = vpop.eup %537  ;;  %v455_v60 = vpack.c.bf16 %v536_v57, %v532_v55 }
 0x10a   :  { %v540_v61 = vpop.eup %539  ;;  %363 = vst [vmem:[#allocation5 + $0x10] sm:$0xff] %v451_v58 }
 0x10b   :  { %v542_v62 = vpop.eup %541  ;;  %392 = vst [vmem:[#allocation5 + $0x30] sm:$0xff] %v455_v60 }
 0x10c   :  { %v544_v63 = vpop.eup %543  ;;  %v452_v0 = vpack.c.bf16 %v542_v62, %v538_v59 }
 0x10d   :  { %v456_v1 = vpack.c.bf16 %v544_v63, %v540_v61 }
 0x10e   :  { %364 = vst [vmem:[#allocation5 + $0x18] sm:$0xff] %v452_v0 }
 0x10f   :  { %393 = vst [vmem:[#allocation5 + $0x38] sm:$0xff] %v456_v1 }
 0x110   :  { %576 = shalt.err (!%p573_p9)
}
 0x111   :  { %s595_s4 = smov 128   ;;  %s596_s5 = smov 8  }
 0x112   :  { %405 = dma.vmem_to_hbm [thread:$0]  %s400_s2, 1024, %s644_s3, [#allocation4], %s595_s4, %s595_s4, %s596_s5  }
 0x113   :  { %587 = dma.done.wait [#allocation4], 1024  }
 0x114   :  { %588 = vsyncadd [#allocation4], 4294966272 }
 0x115   :  { %409 = vsyncpa [#allocation3], 1 }
 0x116   :  { %410 = vsyncpa [#allocation4], 1 }

</bundles_post_ra>
